<compile_context>
chip_gen: v6e
topology: v6e:2x2x1
jax: 0.10.0
libtpu: 0.0.40
codegen_flags: <defaults>
</compile_context>

<pallas_src>
import functools

import jax
import jax.numpy as jnp
from jax.experimental import pallas as pl
from jax.experimental.pallas import tpu as pltpu


def _lstm_cls_kernel(x_ref, wih_ref, whh_ref, wcls_ref, bcls_ref, out_ref, *, N, T):
    """Whole forward pass, single invocation, everything VMEM-resident.

    x_ref   : (T*N, D+1) time-major inputs with a trailing ones column (bias fold).
    wih_ref : (D+1, 4H)  input-projection weights (last row = b_ih + b_hh), gate
              order (i, f, o, g).
    whh_ref : (H, 4H)    recurrent weights, same gate order, pre-transposed.
    wcls_ref: (H, O), bcls_ref: (1, O) classifier head.
    out_ref : (N, O) logits.
    """
    H = whh_ref.shape[0]
    H3 = 3 * H

    # ---- loop-invariant loads (issued once, reused every timestep) ----
    whh = whh_ref[...]                    # (H, 4H) fused recurrent weight
    wcls = wcls_ref[...]                  # (H, O)
    bcls = bcls_ref[...]                  # (1, O)

    # ---- hoisted input projection: ONE (T*N, D+1) @ (D+1, 4H) MXU matmul ----
    # Bias is folded in via the ones column, so gx is ready to use as-is.
    gx = jnp.dot(x_ref[...], wih_ref[...],
                 preferred_element_type=jnp.float32)   # (T*N, 4H), time-major

    h = jnp.zeros((N, H), jnp.float32)
    c = jnp.zeros((N, H), jnp.float32)

    # T is static and small: static Python loop == fully unrolled recurrence with
    # only static slices (most robust form for Mosaic lowering).
    for t in range(T):
        # One lane-dense recurrent matmul + one vreg-wide add per step.
        pre = gx[t * N:(t + 1) * N, :] + jnp.dot(
            h, whh, preferred_element_type=jnp.float32)        # (N, 4H)

        # 3 EUP pushes per step: sigmoid over the contiguous i|f|o block,
        # tanh over g, tanh over c.
        sig = jax.nn.sigmoid(pre[:, :H3])                       # (N, 3H) = i|f|o
        g_g = jnp.tanh(pre[:, H3:])                             # (N, H)

        # Static 32-lane gate slices, off the serial MXU/EUP chain.
        i_g = sig[:, 0 * H:1 * H]
        f_g = sig[:, 1 * H:2 * H]
        o_g = sig[:, 2 * H:3 * H]

        c = f_g * c + i_g * g_g
        h = o_g * jnp.tanh(c)

    # Classifier head on the final hidden state: out = h_T @ W_cls^T + b_cls
    out_ref[...] = (jnp.dot(h, wcls, preferred_element_type=jnp.float32)
                    + bcls).astype(out_ref.dtype)


@functools.partial(jax.jit, static_argnames=("hidden_size", "output_size"))
def lstm_classifier_forward(inputs, params, *, hidden_size, output_size):
    """inputs: (N, T, V, C) float32. Returns logits (N, output_size)."""
    N, T, V, C = inputs.shape
    D = V * C
    H = hidden_size
    O = output_size

    w_ih, w_hh, b_ih, b_hh, w_cls, b_cls = params

    # Reorder gates (i, f, g, o) -> (i, f, o, g) so sigmoid covers one contiguous
    # 3H block inside the kernel. Pure wrapper-side layout plumbing (XLA, free).
    def reorder(w):
        return jnp.concatenate(
            [w[0 * H:1 * H], w[1 * H:2 * H], w[3 * H:4 * H], w[2 * H:3 * H]], axis=0)

    w_ih_r = reorder(w_ih)                 # (4H, D)
    w_hh_r = reorder(w_hh)                 # (4H, H)
    b_r = reorder(b_ih + b_hh)             # (4H,) combined LSTM bias

    # Time-major x with a ones column: folds the LSTM bias into W_ih (one fewer
    # operand) and makes gx fall out of the projection already time-major.
    x_tm = inputs.reshape(N, T, D).transpose(1, 0, 2).reshape(T * N, D)
    x_aug = jnp.concatenate([x_tm, jnp.ones((T * N, 1), jnp.float32)], axis=1)

    wih_aug = jnp.concatenate([w_ih_r.T, b_r.reshape(1, 4 * H)], axis=0)  # (D+1, 4H)
    whh_cat = w_hh_r.T                                                    # (H, 4H)
    wcls_t = w_cls.T                                                      # (H, O)
    bcls = b_cls.reshape(1, O)

    kernel = functools.partial(_lstm_cls_kernel, N=N, T=T)
    vmem = pl.BlockSpec(memory_space=pltpu.MemorySpace.VMEM)

    return pl.pallas_call(
        kernel,
        out_shape=jax.ShapeDtypeStruct((N, O), jnp.float32),
        in_specs=[vmem] * 5,
        out_specs=vmem,
    )(x_aug, wih_aug, whh_cat, wcls_t, bcls)


def init_params(key, input_size, hidden_size, output_size):
    """Deterministic init matching the PyTorch parameter shapes (gate order i,f,g,o)."""
    H = hidden_size
    k_lstm = 1.0 / jnp.sqrt(H)
    k_lin = 1.0 / jnp.sqrt(H)
    ks = jax.random.split(key, 6)
    w_ih = jax.random.uniform(ks[0], (4 * H, input_size), jnp.float32, -k_lstm, k_lstm)
    w_hh = jax.random.uniform(ks[1], (4 * H, H), jnp.float32, -k_lstm, k_lstm)
    b_ih = jax.random.uniform(ks[2], (4 * H,), jnp.float32, -k_lstm, k_lstm)
    b_hh = jax.random.uniform(ks[3], (4 * H,), jnp.float32, -k_lstm, k_lstm)
    w_cls = jax.random.uniform(ks[4], (output_size, H), jnp.float32, -k_lin, k_lin)
    b_cls = jax.random.uniform(ks[5], (output_size,), jnp.float32, -k_lin, k_lin)
    return (w_ih, w_hh, b_ih, b_hh, w_cls, b_cls)


def reference_forward(inputs, params, hidden_size):
    """Pure-JAX reference (PyTorch LSTM semantics, gate order i,f,g,o)."""
    N, T, V, C = inputs.shape
    x = inputs.reshape(N, T, V * C)
    w_ih, w_hh, b_ih, b_hh, w_cls, b_cls = params
    H = hidden_size

    def step(carry, x_t):
        h, c = carry
        gates = x_t @ w_ih.T + h @ w_hh.T + b_ih + b_hh
        i = jax.nn.sigmoid(gates[:, 0 * H:1 * H])
        f = jax.nn.sigmoid(gates[:, 1 * H:2 * H])
        g = jnp.tanh(gates[:, 2 * H:3 * H])
        o = jax.nn.sigmoid(gates[:, 3 * H:4 * H])
        c = f * c + i * g
        h = o * jnp.tanh(c)
        return (h, c), None

    h0 = jnp.zeros((N, H), jnp.float32)
    c0 = jnp.zeros((N, H), jnp.float32)
    (h_T, _), _ = jax.lax.scan(step, (h0, c0), x.transpose(1, 0, 2))
    return h_T @ w_cls.T + b_cls


if __name__ == "__main__":
    # Module config: input_shape = (N, T, V, C)
    N, T, V, C = 2, 8, 4, 4
    hidden_size = 32
    output_size = 10
    input_size = V * C

    key = jax.random.PRNGKey(0)
    k_x, k_p = jax.random.split(key)
    inputs = jax.random.normal(k_x, (N, T, V, C), jnp.float32)
    params = init_params(k_p, input_size, hidden_size, output_size)

    out = lstm_classifier_forward(inputs, params,
                                  hidden_size=hidden_size,
                                  output_size=output_size)
    out = jax.block_until_ready(out)

    ref = reference_forward(inputs, params, hidden_size)
    assert out.shape == (N, output_size)
    assert jnp.allclose(out, ref, atol=1e-4, rtol=1e-4), "mismatch vs reference"

    print("KERNEL_OK")
</pallas_src>

<mosaic_0001>
module attributes {stable_mosaic.version = 11 : i64} {
  func.func @_lstm_cls_kernel(%arg0: memref<16x17xf32, #tpu.memory_space<vmem>>, %arg1: memref<17x128xf32, #tpu.memory_space<vmem>>, %arg2: memref<32x128xf32, #tpu.memory_space<vmem>>, %arg3: memref<32x10xf32, #tpu.memory_space<vmem>>, %arg4: memref<1x10xf32, #tpu.memory_space<vmem>>, %arg5: memref<2x10xf32, #tpu.memory_space<vmem>>) attributes {dimension_semantics = [], scalar_prefetch = 0 : i64, scratch_operands = 0 : i64, tpu.core_type = #tpu.core_type<tc>} {
    %c0 = arith.constant 0 : index
    %c0_0 = arith.constant 0 : index
    %0 = vector.load %arg2[%c0, %c0_0] : memref<32x128xf32, #tpu.memory_space<vmem>>, vector<32x128xf32>
    %c0_1 = arith.constant 0 : index
    %c0_2 = arith.constant 0 : index
    %1 = vector.load %arg3[%c0_1, %c0_2] : memref<32x10xf32, #tpu.memory_space<vmem>>, vector<32x10xf32>
    %c0_3 = arith.constant 0 : index
    %c0_4 = arith.constant 0 : index
    %2 = vector.load %arg4[%c0_3, %c0_4] : memref<1x10xf32, #tpu.memory_space<vmem>>, vector<1x10xf32>
    %c0_5 = arith.constant 0 : index
    %c0_6 = arith.constant 0 : index
    %3 = vector.load %arg0[%c0_5, %c0_6] : memref<16x17xf32, #tpu.memory_space<vmem>>, vector<16x17xf32>
    %c0_7 = arith.constant 0 : index
    %c0_8 = arith.constant 0 : index
    %4 = vector.load %arg1[%c0_7, %c0_8] : memref<17x128xf32, #tpu.memory_space<vmem>>, vector<17x128xf32>
    %cst = arith.constant dense<0.000000e+00> : vector<16x128xf32>
    %5 = tpu.matmul %3, %4, %cst {dimension_numbers = #tpu.dot_dimension_numbers<[1], [0], [0], [1], [0, 0, 1, 1], [], []>} : vector<16x17xf32>, vector<17x128xf32>, vector<16x128xf32> -> vector<16x128xf32>
    %cst_9 = arith.constant 0.000000e+00 : f32
    %6 = vector.broadcast %cst_9 : f32 to vector<2x32xf32>
    %cst_10 = arith.constant 0.000000e+00 : f32
    %7 = vector.broadcast %cst_10 : f32 to vector<2x32xf32>
    %8 = vector.extract_strided_slice %5 {offsets = [0, 0], sizes = [2, 128], strides = [1, 1]} : vector<16x128xf32> to vector<2x128xf32>
    %cst_11 = arith.constant dense<0.000000e+00> : vector<2x128xf32>
    %9 = tpu.matmul %6, %0, %cst_11 {dimension_numbers = #tpu.dot_dimension_numbers<[1], [0], [0], [1], [0, 0, 1, 1], [], []>} : vector<2x32xf32>, vector<32x128xf32>, vector<2x128xf32> -> vector<2x128xf32>
    %10 = arith.addf %8, %9 : vector<2x128xf32>
    %11 = vector.extract_strided_slice %10 {offsets = [0, 0], sizes = [2, 96], strides = [1, 1]} : vector<2x128xf32> to vector<2x96xf32>
    %12 = arith.negf %11 : vector<2x96xf32>
    %13 = math.exp %12 : vector<2x96xf32>
    %cst_12 = arith.constant 1.000000e+00 : f32
    %14 = vector.broadcast %cst_12 : f32 to vector<2x96xf32>
    %15 = arith.addf %14, %13 : vector<2x96xf32>
    %16 = arith.divf %14, %15 : vector<2x96xf32>
    %17 = vector.extract_strided_slice %10 {offsets = [0, 96], sizes = [2, 32], strides = [1, 1]} : vector<2x128xf32> to vector<2x32xf32>
    %18 = math.tanh %17 : vector<2x32xf32>
    %19 = vector.extract_strided_slice %16 {offsets = [0, 0], sizes = [2, 32], strides = [1, 1]} : vector<2x96xf32> to vector<2x32xf32>
    %20 = vector.extract_strided_slice %16 {offsets = [0, 32], sizes = [2, 32], strides = [1, 1]} : vector<2x96xf32> to vector<2x32xf32>
    %21 = vector.extract_strided_slice %16 {offsets = [0, 64], sizes = [2, 32], strides = [1, 1]} : vector<2x96xf32> to vector<2x32xf32>
    %22 = arith.mulf %20, %7 : vector<2x32xf32>
    %23 = arith.mulf %19, %18 : vector<2x32xf32>
    %24 = arith.addf %22, %23 : vector<2x32xf32>
    %25 = math.tanh %24 : vector<2x32xf32>
    %26 = arith.mulf %21, %25 : vector<2x32xf32>
    %27 = vector.extract_strided_slice %5 {offsets = [2, 0], sizes = [2, 128], strides = [1, 1]} : vector<16x128xf32> to vector<2x128xf32>
    %cst_13 = arith.constant dense<0.000000e+00> : vector<2x128xf32>
    %28 = tpu.matmul %26, %0, %cst_13 {dimension_numbers = #tpu.dot_dimension_numbers<[1], [0], [0], [1], [0, 0, 1, 1], [], []>} : vector<2x32xf32>, vector<32x128xf32>, vector<2x128xf32> -> vector<2x128xf32>
    %29 = arith.addf %27, %28 : vector<2x128xf32>
    %30 = vector.extract_strided_slice %29 {offsets = [0, 0], sizes = [2, 96], strides = [1, 1]} : vector<2x128xf32> to vector<2x96xf32>
    %31 = arith.negf %30 : vector<2x96xf32>
    %32 = math.exp %31 : vector<2x96xf32>
    %cst_14 = arith.constant 1.000000e+00 : f32
    %33 = vector.broadcast %cst_14 : f32 to vector<2x96xf32>
    %34 = arith.addf %33, %32 : vector<2x96xf32>
    %35 = arith.divf %33, %34 : vector<2x96xf32>
    %36 = vector.extract_strided_slice %29 {offsets = [0, 96], sizes = [2, 32], strides = [1, 1]} : vector<2x128xf32> to vector<2x32xf32>
    %37 = math.tanh %36 : vector<2x32xf32>
    %38 = vector.extract_strided_slice %35 {offsets = [0, 0], sizes = [2, 32], strides = [1, 1]} : vector<2x96xf32> to vector<2x32xf32>
    %39 = vector.extract_strided_slice %35 {offsets = [0, 32], sizes = [2, 32], strides = [1, 1]} : vector<2x96xf32> to vector<2x32xf32>
    %40 = vector.extract_strided_slice %35 {offsets = [0, 64], sizes = [2, 32], strides = [1, 1]} : vector<2x96xf32> to vector<2x32xf32>
    %41 = arith.mulf %39, %24 : vector<2x32xf32>
    %42 = arith.mulf %38, %37 : vector<2x32xf32>
    %43 = arith.addf %41, %42 : vector<2x32xf32>
    %44 = math.tanh %43 : vector<2x32xf32>
    %45 = arith.mulf %40, %44 : vector<2x32xf32>
    %46 = vector.extract_strided_slice %5 {offsets = [4, 0], sizes = [2, 128], strides = [1, 1]} : vector<16x128xf32> to vector<2x128xf32>
    %cst_15 = arith.constant dense<0.000000e+00> : vector<2x128xf32>
    %47 = tpu.matmul %45, %0, %cst_15 {dimension_numbers = #tpu.dot_dimension_numbers<[1], [0], [0], [1], [0, 0, 1, 1], [], []>} : vector<2x32xf32>, vector<32x128xf32>, vector<2x128xf32> -> vector<2x128xf32>
    %48 = arith.addf %46, %47 : vector<2x128xf32>
    %49 = vector.extract_strided_slice %48 {offsets = [0, 0], sizes = [2, 96], strides = [1, 1]} : vector<2x128xf32> to vector<2x96xf32>
    %50 = arith.negf %49 : vector<2x96xf32>
    %51 = math.exp %50 : vector<2x96xf32>
    %cst_16 = arith.constant 1.000000e+00 : f32
    %52 = vector.broadcast %cst_16 : f32 to vector<2x96xf32>
    %53 = arith.addf %52, %51 : vector<2x96xf32>
    %54 = arith.divf %52, %53 : vector<2x96xf32>
    %55 = vector.extract_strided_slice %48 {offsets = [0, 96], sizes = [2, 32], strides = [1, 1]} : vector<2x128xf32> to vector<2x32xf32>
    %56 = math.tanh %55 : vector<2x32xf32>
    %57 = vector.extract_strided_slice %54 {offsets = [0, 0], sizes = [2, 32], strides = [1, 1]} : vector<2x96xf32> to vector<2x32xf32>
    %58 = vector.extract_strided_slice %54 {offsets = [0, 32], sizes = [2, 32], strides = [1, 1]} : vector<2x96xf32> to vector<2x32xf32>
    %59 = vector.extract_strided_slice %54 {offsets = [0, 64], sizes = [2, 32], strides = [1, 1]} : vector<2x96xf32> to vector<2x32xf32>
    %60 = arith.mulf %58, %43 : vector<2x32xf32>
    %61 = arith.mulf %57, %56 : vector<2x32xf32>
    %62 = arith.addf %60, %61 : vector<2x32xf32>
    %63 = math.tanh %62 : vector<2x32xf32>
    %64 = arith.mulf %59, %63 : vector<2x32xf32>
    %65 = vector.extract_strided_slice %5 {offsets = [6, 0], sizes = [2, 128], strides = [1, 1]} : vector<16x128xf32> to vector<2x128xf32>
    %cst_17 = arith.constant dense<0.000000e+00> : vector<2x128xf32>
    %66 = tpu.matmul %64, %0, %cst_17 {dimension_numbers = #tpu.dot_dimension_numbers<[1], [0], [0], [1], [0, 0, 1, 1], [], []>} : vector<2x32xf32>, vector<32x128xf32>, vector<2x128xf32> -> vector<2x128xf32>
    %67 = arith.addf %65, %66 : vector<2x128xf32>
    %68 = vector.extract_strided_slice %67 {offsets = [0, 0], sizes = [2, 96], strides = [1, 1]} : vector<2x128xf32> to vector<2x96xf32>
    %69 = arith.negf %68 : vector<2x96xf32>
    %70 = math.exp %69 : vector<2x96xf32>
    %cst_18 = arith.constant 1.000000e+00 : f32
    %71 = vector.broadcast %cst_18 : f32 to vector<2x96xf32>
    %72 = arith.addf %71, %70 : vector<2x96xf32>
    %73 = arith.divf %71, %72 : vector<2x96xf32>
    %74 = vector.extract_strided_slice %67 {offsets = [0, 96], sizes = [2, 32], strides = [1, 1]} : vector<2x128xf32> to vector<2x32xf32>
    %75 = math.tanh %74 : vector<2x32xf32>
    %76 = vector.extract_strided_slice %73 {offsets = [0, 0], sizes = [2, 32], strides = [1, 1]} : vector<2x96xf32> to vector<2x32xf32>
    %77 = vector.extract_strided_slice %73 {offsets = [0, 32], sizes = [2, 32], strides = [1, 1]} : vector<2x96xf32> to vector<2x32xf32>
    %78 = vector.extract_strided_slice %73 {offsets = [0, 64], sizes = [2, 32], strides = [1, 1]} : vector<2x96xf32> to vector<2x32xf32>
    %79 = arith.mulf %77, %62 : vector<2x32xf32>
    %80 = arith.mulf %76, %75 : vector<2x32xf32>
    %81 = arith.addf %79, %80 : vector<2x32xf32>
    %82 = math.tanh %81 : vector<2x32xf32>
    %83 = arith.mulf %78, %82 : vector<2x32xf32>
    %84 = vector.extract_strided_slice %5 {offsets = [8, 0], sizes = [2, 128], strides = [1, 1]} : vector<16x128xf32> to vector<2x128xf32>
    %cst_19 = arith.constant dense<0.000000e+00> : vector<2x128xf32>
    %85 = tpu.matmul %83, %0, %cst_19 {dimension_numbers = #tpu.dot_dimension_numbers<[1], [0], [0], [1], [0, 0, 1, 1], [], []>} : vector<2x32xf32>, vector<32x128xf32>, vector<2x128xf32> -> vector<2x128xf32>
    %86 = arith.addf %84, %85 : vector<2x128xf32>
    %87 = vector.extract_strided_slice %86 {offsets = [0, 0], sizes = [2, 96], strides = [1, 1]} : vector<2x128xf32> to vector<2x96xf32>
    %88 = arith.negf %87 : vector<2x96xf32>
    %89 = math.exp %88 : vector<2x96xf32>
    %cst_20 = arith.constant 1.000000e+00 : f32
    %90 = vector.broadcast %cst_20 : f32 to vector<2x96xf32>
    %91 = arith.addf %90, %89 : vector<2x96xf32>
    %92 = arith.divf %90, %91 : vector<2x96xf32>
    %93 = vector.extract_strided_slice %86 {offsets = [0, 96], sizes = [2, 32], strides = [1, 1]} : vector<2x128xf32> to vector<2x32xf32>
    %94 = math.tanh %93 : vector<2x32xf32>
    %95 = vector.extract_strided_slice %92 {offsets = [0, 0], sizes = [2, 32], strides = [1, 1]} : vector<2x96xf32> to vector<2x32xf32>
    %96 = vector.extract_strided_slice %92 {offsets = [0, 32], sizes = [2, 32], strides = [1, 1]} : vector<2x96xf32> to vector<2x32xf32>
    %97 = vector.extract_strided_slice %92 {offsets = [0, 64], sizes = [2, 32], strides = [1, 1]} : vector<2x96xf32> to vector<2x32xf32>
    %98 = arith.mulf %96, %81 : vector<2x32xf32>
    %99 = arith.mulf %95, %94 : vector<2x32xf32>
    %100 = arith.addf %98, %99 : vector<2x32xf32>
    %101 = math.tanh %100 : vector<2x32xf32>
    %102 = arith.mulf %97, %101 : vector<2x32xf32>
    %103 = vector.extract_strided_slice %5 {offsets = [10, 0], sizes = [2, 128], strides = [1, 1]} : vector<16x128xf32> to vector<2x128xf32>
    %cst_21 = arith.constant dense<0.000000e+00> : vector<2x128xf32>
    %104 = tpu.matmul %102, %0, %cst_21 {dimension_numbers = #tpu.dot_dimension_numbers<[1], [0], [0], [1], [0, 0, 1, 1], [], []>} : vector<2x32xf32>, vector<32x128xf32>, vector<2x128xf32> -> vector<2x128xf32>
    %105 = arith.addf %103, %104 : vector<2x128xf32>
    %106 = vector.extract_strided_slice %105 {offsets = [0, 0], sizes = [2, 96], strides = [1, 1]} : vector<2x128xf32> to vector<2x96xf32>
    %107 = arith.negf %106 : vector<2x96xf32>
    %108 = math.exp %107 : vector<2x96xf32>
    %cst_22 = arith.constant 1.000000e+00 : f32
    %109 = vector.broadcast %cst_22 : f32 to vector<2x96xf32>
    %110 = arith.addf %109, %108 : vector<2x96xf32>
    %111 = arith.divf %109, %110 : vector<2x96xf32>
    %112 = vector.extract_strided_slice %105 {offsets = [0, 96], sizes = [2, 32], strides = [1, 1]} : vector<2x128xf32> to vector<2x32xf32>
    %113 = math.tanh %112 : vector<2x32xf32>
    %114 = vector.extract_strided_slice %111 {offsets = [0, 0], sizes = [2, 32], strides = [1, 1]} : vector<2x96xf32> to vector<2x32xf32>
    %115 = vector.extract_strided_slice %111 {offsets = [0, 32], sizes = [2, 32], strides = [1, 1]} : vector<2x96xf32> to vector<2x32xf32>
    %116 = vector.extract_strided_slice %111 {offsets = [0, 64], sizes = [2, 32], strides = [1, 1]} : vector<2x96xf32> to vector<2x32xf32>
    %117 = arith.mulf %115, %100 : vector<2x32xf32>
    %118 = arith.mulf %114, %113 : vector<2x32xf32>
    %119 = arith.addf %117, %118 : vector<2x32xf32>
    %120 = math.tanh %119 : vector<2x32xf32>
    %121 = arith.mulf %116, %120 : vector<2x32xf32>
    %122 = vector.extract_strided_slice %5 {offsets = [12, 0], sizes = [2, 128], strides = [1, 1]} : vector<16x128xf32> to vector<2x128xf32>
    %cst_23 = arith.constant dense<0.000000e+00> : vector<2x128xf32>
    %123 = tpu.matmul %121, %0, %cst_23 {dimension_numbers = #tpu.dot_dimension_numbers<[1], [0], [0], [1], [0, 0, 1, 1], [], []>} : vector<2x32xf32>, vector<32x128xf32>, vector<2x128xf32> -> vector<2x128xf32>
    %124 = arith.addf %122, %123 : vector<2x128xf32>
    %125 = vector.extract_strided_slice %124 {offsets = [0, 0], sizes = [2, 96], strides = [1, 1]} : vector<2x128xf32> to vector<2x96xf32>
    %126 = arith.negf %125 : vector<2x96xf32>
    %127 = math.exp %126 : vector<2x96xf32>
    %cst_24 = arith.constant 1.000000e+00 : f32
    %128 = vector.broadcast %cst_24 : f32 to vector<2x96xf32>
    %129 = arith.addf %128, %127 : vector<2x96xf32>
    %130 = arith.divf %128, %129 : vector<2x96xf32>
    %131 = vector.extract_strided_slice %124 {offsets = [0, 96], sizes = [2, 32], strides = [1, 1]} : vector<2x128xf32> to vector<2x32xf32>
    %132 = math.tanh %131 : vector<2x32xf32>
    %133 = vector.extract_strided_slice %130 {offsets = [0, 0], sizes = [2, 32], strides = [1, 1]} : vector<2x96xf32> to vector<2x32xf32>
    %134 = vector.extract_strided_slice %130 {offsets = [0, 32], sizes = [2, 32], strides = [1, 1]} : vector<2x96xf32> to vector<2x32xf32>
    %135 = vector.extract_strided_slice %130 {offsets = [0, 64], sizes = [2, 32], strides = [1, 1]} : vector<2x96xf32> to vector<2x32xf32>
    %136 = arith.mulf %134, %119 : vector<2x32xf32>
    %137 = arith.mulf %133, %132 : vector<2x32xf32>
    %138 = arith.addf %136, %137 : vector<2x32xf32>
    %139 = math.tanh %138 : vector<2x32xf32>
    %140 = arith.mulf %135, %139 : vector<2x32xf32>
    %141 = vector.extract_strided_slice %5 {offsets = [14, 0], sizes = [2, 128], strides = [1, 1]} : vector<16x128xf32> to vector<2x128xf32>
    %cst_25 = arith.constant dense<0.000000e+00> : vector<2x128xf32>
    %142 = tpu.matmul %140, %0, %cst_25 {dimension_numbers = #tpu.dot_dimension_numbers<[1], [0], [0], [1], [0, 0, 1, 1], [], []>} : vector<2x32xf32>, vector<32x128xf32>, vector<2x128xf32> -> vector<2x128xf32>
    %143 = arith.addf %141, %142 : vector<2x128xf32>
    %144 = vector.extract_strided_slice %143 {offsets = [0, 0], sizes = [2, 96], strides = [1, 1]} : vector<2x128xf32> to vector<2x96xf32>
    %145 = arith.negf %144 : vector<2x96xf32>
    %146 = math.exp %145 : vector<2x96xf32>
    %cst_26 = arith.constant 1.000000e+00 : f32
    %147 = vector.broadcast %cst_26 : f32 to vector<2x96xf32>
    %148 = arith.addf %147, %146 : vector<2x96xf32>
    %149 = arith.divf %147, %148 : vector<2x96xf32>
    %150 = vector.extract_strided_slice %143 {offsets = [0, 96], sizes = [2, 32], strides = [1, 1]} : vector<2x128xf32> to vector<2x32xf32>
    %151 = math.tanh %150 : vector<2x32xf32>
    %152 = vector.extract_strided_slice %149 {offsets = [0, 0], sizes = [2, 32], strides = [1, 1]} : vector<2x96xf32> to vector<2x32xf32>
    %153 = vector.extract_strided_slice %149 {offsets = [0, 32], sizes = [2, 32], strides = [1, 1]} : vector<2x96xf32> to vector<2x32xf32>
    %154 = vector.extract_strided_slice %149 {offsets = [0, 64], sizes = [2, 32], strides = [1, 1]} : vector<2x96xf32> to vector<2x32xf32>
    %155 = arith.mulf %153, %138 : vector<2x32xf32>
    %156 = arith.mulf %152, %151 : vector<2x32xf32>
    %157 = arith.addf %155, %156 : vector<2x32xf32>
    %158 = math.tanh %157 : vector<2x32xf32>
    %159 = arith.mulf %154, %158 : vector<2x32xf32>
    %cst_27 = arith.constant dense<0.000000e+00> : vector<2x10xf32>
    %160 = tpu.matmul %159, %1, %cst_27 {dimension_numbers = #tpu.dot_dimension_numbers<[1], [0], [0], [1], [0, 0, 1, 1], [], []>} : vector<2x32xf32>, vector<32x10xf32>, vector<2x10xf32> -> vector<2x10xf32>
    %161 = vector.broadcast %2 : vector<1x10xf32> to vector<2x10xf32>
    %162 = arith.addf %160, %161 : vector<2x10xf32>
    %c0_28 = arith.constant 0 : index
    %c0_29 = arith.constant 0 : index
    %163 = vector.load %arg5[%c0_28, %c0_29] : memref<2x10xf32, #tpu.memory_space<vmem>>, vector<2x10xf32>
    tpu.vector_store %arg5[%c0_28, %c0_29], %162 {strides = array<i32>} : memref<2x10xf32, #tpu.memory_space<vmem>>, vector<2x10xf32>,
    return
  }
}

</mosaic_0001>

<bundles_post_ra>
// kernel: lstm_classifier_forward.1
= control target key start
LH: loop header
LB: loop body
LE: loop exit
PB: predicated region body
PF: predicated region fallthrough
CT: control target
= control target key end

     0   :  { %vm42_vm0 = vcmask 1040384   ;;  %v1331_v3 = vmov 0.0   ;;  %vm35_vm1 = vcmask 138240   ;;  %s1558_s0 = inlined_call_operand.vmem [shape: f32[16,17], index: 0, kind: input, shape index: {}]   ;;  %s1559_s1 = inlined_call_operand.vmem [shape: f32[17,128], index: 1, kind: input, shape index: {}]   ;;  %s1560_s2 = inlined_call_operand.vmem [shape: f32[32,128], index: 2, kind: input, shape index: {}]   ;;  %s1561_s3 = inlined_call_operand.vmem [shape: f32[32,10], index: 3, kind: input, shape index: {}]   ;;  %s1562_s4 = inlined_call_operand.vmem [shape: f32[1,10], index: 4, kind: input, shape index: {}]   ;;  %s1563_s5 = inlined_call_operand.hbm [shape: f32[2,10], index: 5, kind: output, shape index: {}]  }
   0x1   :  { %v34_v0 = vld [vmem:[%s1559_s1 + $0x10] sm:$0x1]  ;;  %v1372_v1 = vld [vmem:[%s1560_s2 + $0x18] sm:$0xff]  ;;  %v33_v2 = vld [vmem:[%s1559_s1 + $0x8] sm:$0xff]  ;;  %1141 = vmatprep.subr.mxu1 %v1331_v3 }
   0x2   :  { %1132 = vmatprep.subr.msk.mxu0 %vm42_vm0, %v34_v0  ;;  %v1381_v4 = vld [vmem:[%s1560_s2 + $0x10] sm:$0xff]  ;;  %1142 = vmatpush3.msra.mxu1 %v1372_v1  ;;  %v32_v5 = vld [vmem:[%s1559_s1] sm:$0xff] }
   0x3   :  { %1133 = vmatpush3.msk.msra.mxu0 %vm42_vm0, %v34_v0  ;;  %1143 = vmatprep.subr.mxu1 %v1331_v3  ;;  %v30_v6 = vld [vmem:[%s1558_s0] sm:$0xff] }
   0x4   :  { %1134 = vmatprep.subr.mxu0 %v33_v2 }
   0x5   :  { %10 = vsyncpa [#allocation3], 0  ;;  %1135 = vmatpush3.msra.mxu0 %v33_v2  ;;  %1144 = vmatpush3.msra.mxu1 %v1381_v4  ;;  %v1395_v7 = vld [vmem:[%s1560_s2 + $0x8] sm:$0xff]  ;;  %v1404_v9 = vld [vmem:[%s1560_s2] sm:$0xff]  ;;  %vm1332_vm2 = vmmov 0   ;;  %s1334_s2 = smov 64  }
   0x6   :  { %v31_v8 = vld [vmem:[%s1558_s0 + $0x8] sm:$0xff]  ;;  %1136 = vmatprep.subr.mxu0 %v32_v5  ;;  %1145 = vmatprep.subr.mxu1 %v1331_v3  ;;  %s1333_s0 = smov 32   ;;  %vm121_vm3 = vcmask 261120   ;;  %vm1046_vm4 = vcmask 74752  }
   0x7   :  { %1137 = vmatpush3.msra.mxu0 %v32_v5  ;;  %1138 = vmatprep.mubr.msk.f32.mxu0 %vm35_vm1, %v30_v6 }
   0x8   :  { %1146 = vmatpush3.msra.mxu1 %v1395_v7  ;;  %1139 = vmatmul.mubr.msk.f32.vlgmr.msra.gmra.mxu0 %vm35_vm1, %v31_v8 }
   0x9   :  { %1147 = vmatprep.subr.mxu1 %v1331_v3  ;;  %1149 = vmatprep.mubr.msk.f32.mxu1 %vm1332_vm2, %v1331_v3 }
   0xa   :  { %1148 = vmatpush3.msra.mxu1 %v1404_v9  ;;  %1152 = vmatprep.subr.mxu0 %v1331_v3 }
   0xb   :  { %1150 = vmatmul.mubr.f32.vlgmr.msra.gmra.mxu1 %v1331_v3  ;;  %1153 = vmatpush3.msra.mxu0 %v1372_v1 }
   0xc   :  { %1154 = vmatprep.subr.mxu0 %v1331_v3  ;;  %1160 = vmatprep.mubr.msk.f32.mxu0 %vm1332_vm2, %v1331_v3 }
   0xd   :  { %1155 = vmatpush3.msra.mxu0 %v1381_v4  ;;  %1163 = vmatprep.subr.mxu1 %v1331_v3 }
   0xe   :  { %1156 = vmatprep.subr.mxu0 %v1331_v3  ;;  %1164 = vmatpush3.msra.mxu1 %v1372_v1 }
   0xf   :  { %1157 = vmatpush3.msra.mxu0 %v1395_v7  ;;  %1165 = vmatprep.subr.mxu1 %v1331_v3 }
  0x10   :  { %1158 = vmatprep.subr.mxu0 %v1331_v3  ;;  %1166 = vmatpush3.msra.mxu1 %v1381_v4 }
  0x11   :  { %1159 = vmatpush3.msra.mxu0 %v1404_v9  ;;  %1167 = vmatprep.subr.mxu1 %v1331_v3 }
  0x12   :  { %1168 = vmatpush3.msra.mxu1 %v1395_v7  ;;  %1171 = vmatprep.mubr.msk.f32.mxu1 %vm1332_vm2, %v1331_v3 }
  0x13   :  { %1169 = vmatprep.subr.mxu1 %v1331_v3  ;;  %1174 = vmatprep.subr.mxu0 %v1331_v3 }
  0x14   :  { %1170 = vmatpush3.msra.mxu1 %v1404_v9 }
  0x15   :  { %1185 = vmatprep.subr.mxu1 %v1331_v3 }
  0xc8   :  { %v1434_v10 = vpop.f32.mrf.mxu0 }
  0xca   :  { %v1436_v11 = vpop.f32.mrf.mxu0 }
  0xcb   :  { %v191_v12 = vpop.f32.mrf.mxu1 }
  0xcc   :  { %v195_v13 = vadd.f32 %v191_v12, %v1436_v11 }
  0xcd   :  { %v1151_v14 = vpop.f32.mrf.mxu1 }
  0xce   :  { %1245 = vtanh.f32 %v195_v13  ;;  %v1065_v16 = vmul.f32 -1.442695, %v195_v13 }
  0xd0   :  { %1247 = vpow2.f32 %v1065_v16 }
  0xdb   :  { %v1246_v15 = vpop.eup %1245 }
  0xdc   :  { %205 = vrot.lane.b32.xlu0 %v1246_v15, %s1333_s0 }
  0xdd   :  { %v1248_v17 = vpop.eup %1247 }
  0xde   :  { %v199_v18 = vadd.f32 1.0, %v1248_v17 }
  0xe0   :  { %1249 = vrcp.f32 %v199_v18 }
  0xed   :  { %v1250_v19 = vpop.eup %1249 }
  0xee   :  { %v203_v22 = vmul.f32 0.0, %v1250_v19 }
 0x14e   :  { %v206_v20 = vpop.permute.xlu0 %205 }
 0x14f   :  { %v208_v21 = vmul.f32 %v1250_v19, %v206_v20 }
 0x151   :  { %210 = vrot.lane.b32.xlu0 %v208_v21, %s1333_s0 }
 0x1c3   :  { %v211_v23 = vpop.permute.xlu0 %210 }
 0x1c4   :  { %v213_v24 = vadd.f32 %v211_v23, %v203_v22 }
 0x1c6   :  { %1251 = vtanh.f32 %v213_v24  ;;  %v307_v40 = vrot.slane %v213_v24, 6 }
 0x1d3   :  { %v1252_v25 = vpop.eup %1251 }
 0x1d4   :  { %216 = vrot.lane.b32.xlu1 %v1252_v25, %s1333_s0 }
 0x246   :  { %v217_v26 = vpop.permute.xlu1 %216 }
 0x247   :  { %v219_v27 = vmul.f32 %v1250_v19, %v217_v26 }
 0x249   :  { %221 = vrot.lane.b32.xlu1 %v219_v27, %s1334_s2 }
 0x2bb   :  { %v222_v28 = vpop.permute.xlu1 %221 }
 0x2bc   :  { %1161 = vmatmul.mubr.msk.f32.vlgmr.msra.gmra.mxu0 %vm121_vm3, %v222_v28 }
 0x2bd   :  { %1175 = vmatpush3.msra.mxu0 %v1372_v1  ;;  %1182 = vmatprep.mubr.msk.f32.mxu0 %vm1332_vm2, %v1331_v3 }
 0x2be   :  { %1176 = vmatprep.subr.mxu0 %v1331_v3 }
 0x2bf   :  { %1177 = vmatpush3.msra.mxu0 %v1381_v4 }
 0x2c0   :  { %1178 = vmatprep.subr.mxu0 %v1331_v3 }
 0x2c1   :  { %1179 = vmatpush3.msra.mxu0 %v1395_v7 }
 0x2c2   :  { %1180 = vmatprep.subr.mxu0 %v1331_v3 }
 0x2c3   :  { %1181 = vmatpush3.msra.mxu0 %v1404_v9 }
 0x2c4   :  { %1196 = vmatprep.subr.mxu0 %v1331_v3 }
 0x37c   :  { %v291_v29 = vpop.f32.mrf.mxu0 }
 0x37d   :  { %v296_v30 = vrot.slane %v291_v29, 6 }
 0x37e   :  { %v1162_v31 = vpop.f32.mrf.mxu0 }
 0x37f   :  { %v298_v32 = vadd.f32 %v296_v30, %v1436_v11 }
 0x381   :  { %1253 = vtanh.f32 %v298_v32  ;;  %v1067_v34 = vmul.f32 -1.442695, %v298_v32 }
 0x383   :  { %1255 = vpow2.f32 %v1067_v34 }
 0x38e   :  { %v1254_v33 = vpop.eup %1253 }
 0x38f   :  { %311 = vrot.lane.b32.xlu0 %v1254_v33, %s1333_s0 }
 0x390   :  { %v1256_v35 = vpop.eup %1255 }
 0x391   :  { %v302_v36 = vadd.f32 1.0, %v1256_v35 }
 0x393   :  { %1257 = vrcp.f32 %v302_v36 }
 0x3a0   :  { %v1258_v37 = vpop.eup %1257 }
 0x3a1   :  { %v309_v41 = vmul.f32 %v1258_v37, %v307_v40 }
 0x401   :  { %v312_v38 = vpop.permute.xlu0 %311 }
 0x402   :  { %v314_v39 = vmul.f32 %v1258_v37, %v312_v38 }
 0x404   :  { %316 = vrot.lane.b32.xlu1 %v314_v39, %s1333_s0 }
 0x476   :  { %v317_v42 = vpop.permute.xlu1 %316 }
 0x477   :  { %v319_v43 = vadd.f32 %v317_v42, %v309_v41 }
 0x479   :  { %1259 = vtanh.f32 %v319_v43  ;;  %v414_v60 = vrot.slane %v319_v43, 6 }
 0x486   :  { %v1260_v44 = vpop.eup %1259 }
 0x487   :  { %322 = vrot.lane.b32.xlu0 %v1260_v44, %s1333_s0 }
 0x4f9   :  { %v323_v45 = vpop.permute.xlu0 %322 }
 0x4fa   :  { %v325_v46 = vmul.f32 %v1258_v37, %v323_v45 }
 0x4fc   :  { %v327_v47 = vrot.slane %v325_v46, 2 }
 0x4fe   :  { %328 = vrot.lane.b32.xlu1 %v327_v47, %s1334_s2 }
 0x570   :  { %v329_v48 = vpop.permute.xlu1 %328 }
 0x571   :  { %1172 = vmatmul.mubr.msk.f32.vlgmr.msra.gmra.mxu1 %vm121_vm3, %v329_v48 }
 0x572   :  { %1186 = vmatpush3.msra.mxu1 %v1372_v1  ;;  %1193 = vmatprep.mubr.msk.f32.mxu1 %vm1332_vm2, %v1331_v3 }
 0x573   :  { %1187 = vmatprep.subr.mxu1 %v1331_v3 }
 0x574   :  { %1188 = vmatpush3.msra.mxu1 %v1381_v4 }
 0x575   :  { %1189 = vmatprep.subr.mxu1 %v1331_v3 }
 0x576   :  { %1190 = vmatpush3.msra.mxu1 %v1395_v7 }
 0x577   :  { %1191 = vmatprep.subr.mxu1 %v1331_v3 }
 0x578   :  { %1192 = vmatpush3.msra.mxu1 %v1404_v9 }
 0x579   :  { %1207 = vmatprep.subr.mxu1 %v1331_v3 }
 0x631   :  { %v398_v49 = vpop.f32.mrf.mxu1 }
 0x632   :  { %v403_v50 = vrot.slane %v398_v49, 4 }
 0x633   :  { %v1173_v51 = vpop.f32.mrf.mxu1 }
 0x634   :  { %v405_v52 = vadd.f32 %v403_v50, %v1436_v11 }
 0x636   :  { %1261 = vtanh.f32 %v405_v52  ;;  %v1069_v54 = vmul.f32 -1.442695, %v405_v52 }
 0x638   :  { %1263 = vpow2.f32 %v1069_v54 }
 0x643   :  { %v1262_v53 = vpop.eup %1261 }
 0x644   :  { %418 = vrot.lane.b32.xlu0 %v1262_v53, %s1333_s0 }
 0x645   :  { %v1264_v55 = vpop.eup %1263 }
 0x646   :  { %v409_v56 = vadd.f32 1.0, %v1264_v55 }
 0x648   :  { %1265 = vrcp.f32 %v409_v56 }
 0x655   :  { %v1266_v57 = vpop.eup %1265 }
 0x656   :  { %v416_v61 = vmul.f32 %v1266_v57, %v414_v60 }
 0x6b6   :  { %v419_v58 = vpop.permute.xlu0 %418 }
 0x6b7   :  { %v421_v59 = vmul.f32 %v1266_v57, %v419_v58 }
 0x6b9   :  { %423 = vrot.lane.b32.xlu1 %v421_v59, %s1333_s0 }
 0x72b   :  { %v424_v62 = vpop.permute.xlu1 %423 }
 0x72c   :  { %v426_v63 = vadd.f32 %v424_v62, %v416_v61 }
 0x72e   :  { %1267 = vtanh.f32 %v426_v63  ;;  %v521_v23 = vrot.slane %v426_v63, 6 }
 0x73b   :  { %v1268_v0 = vpop.eup %1267 }
 0x73c   :  { %429 = vrot.lane.b32.xlu0 %v1268_v0, %s1333_s0 }
 0x7ae   :  { %v430_v2 = vpop.permute.xlu0 %429 }
 0x7af   :  { %v432_v5 = vmul.f32 %v1266_v57, %v430_v2 }
 0x7b1   :  { %v434_v6 = vrot.slane %v432_v5, 4 }
 0x7b3   :  { %435 = vrot.lane.b32.xlu1 %v434_v6, %s1334_s2 }
 0x825   :  { %v436_v8 = vpop.permute.xlu1 %435 }
 0x826   :  { %1183 = vmatmul.mubr.msk.f32.vlgmr.msra.gmra.mxu0 %vm121_vm3, %v436_v8 }
 0x827   :  { %1197 = vmatpush3.msra.mxu0 %v1372_v1  ;;  %1204 = vmatprep.mubr.msk.f32.mxu0 %vm1332_vm2, %v1331_v3 }
 0x828   :  { %1198 = vmatprep.subr.mxu0 %v1331_v3 }
 0x829   :  { %1199 = vmatpush3.msra.mxu0 %v1381_v4 }
 0x82a   :  { %1200 = vmatprep.subr.mxu0 %v1331_v3 }
 0x82b   :  { %1201 = vmatpush3.msra.mxu0 %v1395_v7 }
 0x82c   :  { %1202 = vmatprep.subr.mxu0 %v1331_v3 }
 0x82d   :  { %1203 = vmatpush3.msra.mxu0 %v1404_v9 }
 0x82e   :  { %1218 = vmatprep.subr.mxu0 %v1331_v3 }
 0x8e6   :  { %v505_v12 = vpop.f32.mrf.mxu0 }
 0x8e7   :  { %v510_v13 = vrot.slane %v505_v12, 2 }
 0x8e8   :  { %v1184_v14 = vpop.f32.mrf.mxu0 }
 0x8e9   :  { %v512_v15 = vadd.f32 %v510_v13, %v1436_v11 }
 0x8eb   :  { %1269 = vtanh.f32 %v512_v15  ;;  %v1071_v17 = vmul.f32 -1.442695, %v512_v15 }
 0x8ed   :  { %1271 = vpow2.f32 %v1071_v17 }
 0x8f8   :  { %v1270_v16 = vpop.eup %1269 }
 0x8f9   :  { %525 = vrot.lane.b32.xlu0 %v1270_v16, %s1333_s0 }
 0x8fa   :  { %v1272_v18 = vpop.eup %1271 }
 0x8fb   :  { %v516_v19 = vadd.f32 1.0, %v1272_v18 }
 0x8fd   :  { %1273 = vrcp.f32 %v516_v19 }
 0x90a   :  { %v1274_v20 = vpop.eup %1273 }
 0x90b   :  { %v523_v24 = vmul.f32 %v1274_v20, %v521_v23 }
 0x96b   :  { %v526_v21 = vpop.permute.xlu0 %525 }
 0x96c   :  { %v528_v22 = vmul.f32 %v1274_v20, %v526_v21 }
 0x96e   :  { %530 = vrot.lane.b32.xlu1 %v528_v22, %s1333_s0 }
 0x9e0   :  { %v531_v25 = vpop.permute.xlu1 %530 }
 0x9e1   :  { %v533_v26 = vadd.f32 %v531_v25, %v523_v24 }
 0x9e3   :  { %1275 = vtanh.f32 %v533_v26  ;;  %v625_v41 = vrot.slane %v533_v26, 6 }
 0x9f0   :  { %v1276_v11 = vpop.eup %1275 }
 0x9f1   :  { %536 = vrot.lane.b32.xlu0 %v1276_v11, %s1333_s0 }
 0xa63   :  { %v537_v27 = vpop.permute.xlu0 %536 }
 0xa64   :  { %v539_v28 = vmul.f32 %v1274_v20, %v537_v27 }
 0xa66   :  { %v541_v29 = vrot.slane %v539_v28, 6 }
 0xa68   :  { %542 = vrot.lane.b32.xlu1 %v541_v29, %s1334_s2 }
 0xada   :  { %v543_v30 = vpop.permute.xlu1 %542 }
 0xadb   :  { %1194 = vmatmul.mubr.msk.f32.vlgmr.msra.gmra.mxu1 %vm121_vm3, %v543_v30 }
 0xadc   :  { %1208 = vmatpush3.msra.mxu1 %v1372_v1  ;;  %1215 = vmatprep.mubr.msk.f32.mxu1 %vm1332_vm2, %v1331_v3 }
 0xadd   :  { %1209 = vmatprep.subr.mxu1 %v1331_v3 }
 0xade   :  { %1210 = vmatpush3.msra.mxu1 %v1381_v4 }
 0xadf   :  { %1211 = vmatprep.subr.mxu1 %v1331_v3 }
 0xae0   :  { %1212 = vmatpush3.msra.mxu1 %v1395_v7 }
 0xae1   :  { %1213 = vmatprep.subr.mxu1 %v1331_v3 }
 0xae2   :  { %1214 = vmatpush3.msra.mxu1 %v1404_v9 }
 0xae3   :  { %1229 = vmatprep.subr.mxu1 %v1331_v3 }
 0xb9b   :  { %v612_v31 = vpop.f32.mrf.mxu1 }
 0xb9c   :  { %v616_v32 = vadd.f32 %v1434_v10, %v612_v31 }
 0xb9d   :  { %v1195_v33 = vpop.f32.mrf.mxu1 }
 0xb9e   :  { %1277 = vtanh.f32 %v616_v32  ;;  %v1073_v35 = vmul.f32 -1.442695, %v616_v32 }
 0xba0   :  { %1279 = vpow2.f32 %v1073_v35 }
 0xbab   :  { %v1278_v34 = vpop.eup %1277 }
 0xbac   :  { %629 = vrot.lane.b32.xlu0 %v1278_v34, %s1333_s0 }
 0xbad   :  { %v1280_v36 = vpop.eup %1279 }
 0xbae   :  { %v620_v37 = vadd.f32 1.0, %v1280_v36 }
 0xbb0   :  { %1281 = vrcp.f32 %v620_v37 }
 0xbbd   :  { %v1282_v38 = vpop.eup %1281 }
 0xbbe   :  { %v627_v42 = vmul.f32 %v1282_v38, %v625_v41 }
 0xc1e   :  { %v630_v39 = vpop.permute.xlu0 %629 }
 0xc1f   :  { %v632_v40 = vmul.f32 %v1282_v38, %v630_v39 }
 0xc21   :  { %634 = vrot.lane.b32.xlu1 %v632_v40, %s1333_s0 }
 0xc93   :  { %v635_v43 = vpop.permute.xlu1 %634 }
 0xc94   :  { %v637_v44 = vadd.f32 %v635_v43, %v627_v42  ;;  %v27_v42 = vld [vmem:[%s1561_s3 + $0x10] sm:$0xff]  ;;  %v26_v43 = vld [vmem:[%s1561_s3 + $0x8] sm:$0xff] }
 0xc96   :  { %1283 = vtanh.f32 %v637_v44 }
 0xca3   :  { %v1284_v45 = vpop.eup %1283 }
 0xca4   :  { %640 = vrot.lane.b32.xlu0 %v1284_v45, %s1333_s0 }
 0xd16   :  { %v641_v46 = vpop.permute.xlu0 %640 }
 0xd17   :  { %v643_v47 = vmul.f32 %v1282_v38, %v641_v46 }
 0xd19   :  { %645 = vrot.lane.b32.xlu1 %v643_v47, %s1334_s2 }
 0xd8b   :  { %v646_v48 = vpop.permute.xlu1 %645 }
 0xd8c   :  { %1205 = vmatmul.mubr.msk.f32.vlgmr.msra.gmra.mxu0 %vm121_vm3, %v646_v48 }
 0xd8d   :  { %1219 = vmatpush3.msra.mxu0 %v1372_v1  ;;  %1226 = vmatprep.mubr.msk.f32.mxu0 %vm1332_vm2, %v1331_v3 }
 0xd8e   :  { %1220 = vmatprep.subr.mxu0 %v1331_v3 }
 0xd8f   :  { %1221 = vmatpush3.msra.mxu0 %v1381_v4 }
 0xd90   :  { %1222 = vmatprep.subr.mxu0 %v1331_v3 }
 0xd91   :  { %1223 = vmatpush3.msra.mxu0 %v1395_v7 }
 0xd92   :  { %1224 = vmatprep.subr.mxu0 %v1331_v3 }
 0xd93   :  { %1225 = vmatpush3.msra.mxu0 %v1404_v9  ;;  %v731_v9 = vrot.slane %v637_v44, 6  ;;  %v25_v44 = vld [vmem:[%s1561_s3] sm:$0xff] }
 0xe4c   :  { %v715_v49 = vpop.f32.mrf.mxu0 }
 0xe4d   :  { %v720_v50 = vrot.slane %v715_v49, 6 }
 0xe4e   :  { %v1206_v51 = vpop.f32.mrf.mxu0 }
 0xe4f   :  { %v722_v1 = vadd.f32 %v1434_v10, %v720_v50  ;;  %v1080_v50 = vld [vmem:[%s1562_s4] ss:$0 sm:$0xff] }
 0xe51   :  { %1285 = vtanh.f32 %v722_v1  ;;  %v1075_v53 = vmul.f32 -1.442695, %v722_v1 }
 0xe53   :  { %1287 = vpow2.f32 %v1075_v53 }
 0xe5e   :  { %v1286_v52 = vpop.eup %1285 }
 0xe5f   :  { %735 = vrot.lane.b32.xlu0 %v1286_v52, %s1333_s0 }
 0xe60   :  { %v1288_v4 = vpop.eup %1287 }
 0xe61   :  { %v726_v54 = vadd.f32 1.0, %v1288_v4 }
 0xe63   :  { %1289 = vrcp.f32 %v726_v54 }
 0xe70   :  { %v1290_v55 = vpop.eup %1289 }
 0xe71   :  { %v733_v57 = vmul.f32 %v1290_v55, %v731_v9 }
 0xed1   :  { %v736_v7 = vpop.permute.xlu0 %735 }
 0xed2   :  { %v738_v56 = vmul.f32 %v1290_v55, %v736_v7 }
 0xed4   :  { %740 = vrot.lane.b32.xlu1 %v738_v56, %s1333_s0 }
 0xf46   :  { %v741_v58 = vpop.permute.xlu1 %740 }
 0xf47   :  { %v743_v59 = vadd.f32 %v741_v58, %v733_v57 }
 0xf49   :  { %1291 = vtanh.f32 %v743_v59  ;;  %v838_v19 = vrot.slane %v743_v59, 6 }
 0xf56   :  { %v1292_v60 = vpop.eup %1291 }
 0xf57   :  { %746 = vrot.lane.b32.xlu0 %v1292_v60, %s1333_s0 }
 0xfc9   :  { %v747_v61 = vpop.permute.xlu0 %746 }
 0xfca   :  { %v749_v62 = vmul.f32 %v1290_v55, %v747_v61 }
 0xfcc   :  { %v751_v63 = vrot.slane %v749_v62, 2 }
 0xfce   :  { %752 = vrot.lane.b32.xlu1 %v751_v63, %s1334_s2 }
0x1040   :  { %v753_v0 = vpop.permute.xlu1 %752 }
0x1041   :  { %1216 = vmatmul.mubr.msk.f32.vlgmr.msra.gmra.mxu1 %vm121_vm3, %v753_v0 }
0x1042   :  { %1237 = vmatprep.mubr.msk.f32.mxu1 %vm1332_vm2, %v1331_v3 }
0x1101   :  { %v822_v2 = vpop.f32.mrf.mxu1 }
0x1102   :  { %v827_v5 = vrot.slane %v822_v2, 4 }
0x1103   :  { %v1217_v6 = vpop.f32.mrf.mxu1 }
0x1104   :  { %v829_v8 = vadd.f32 %v1434_v10, %v827_v5 }
0x1106   :  { %1293 = vtanh.f32 %v829_v8  ;;  %v1077_v13 = vmul.f32 -1.442695, %v829_v8 }
0x1108   :  { %1295 = vpow2.f32 %v1077_v13 }
0x1113   :  { %v1294_v12 = vpop.eup %1293 }
0x1114   :  { %842 = vrot.lane.b32.xlu0 %v1294_v12, %s1333_s0 }
0x1115   :  { %v1296_v14 = vpop.eup %1295 }
0x1116   :  { %v833_v15 = vadd.f32 1.0, %v1296_v14 }
0x1118   :  { %1297 = vrcp.f32 %v833_v15 }
0x1125   :  { %v1298_v16 = vpop.eup %1297 }
0x1126   :  { %v840_v20 = vmul.f32 %v1298_v16, %v838_v19 }
0x1186   :  { %v843_v17 = vpop.permute.xlu0 %842 }
0x1187   :  { %v845_v18 = vmul.f32 %v1298_v16, %v843_v17 }
0x1189   :  { %847 = vrot.lane.b32.xlu1 %v845_v18, %s1333_s0 }
0x11fb   :  { %v848_v21 = vpop.permute.xlu1 %847 }
0x11fc   :  { %v850_v22 = vadd.f32 %v848_v21, %v840_v20 }
0x11fe   :  { %1299 = vtanh.f32 %v850_v22  ;;  %v945_v38 = vrot.slane %v850_v22, 6 }
0x120b   :  { %v1300_v23 = vpop.eup %1299 }
0x120c   :  { %853 = vrot.lane.b32.xlu0 %v1300_v23, %s1333_s0 }
0x127e   :  { %v854_v24 = vpop.permute.xlu0 %853 }
0x127f   :  { %v856_v25 = vmul.f32 %v1298_v16, %v854_v24 }
0x1281   :  { %v858_v26 = vrot.slane %v856_v25, 4 }
0x1283   :  { %859 = vrot.lane.b32.xlu1 %v858_v26, %s1334_s2 }
0x12f5   :  { %v860_v11 = vpop.permute.xlu1 %859 }
0x12f6   :  { %1227 = vmatmul.mubr.msk.f32.vlgmr.msra.gmra.mxu0 %vm121_vm3, %v860_v11 }
0x13b6   :  { %v929_v27 = vpop.f32.mrf.mxu0 }
0x13b7   :  { %v934_v28 = vrot.slane %v929_v27, 2 }
0x13b8   :  { %v1228_v29 = vpop.f32.mrf.mxu0 }
0x13b9   :  { %v936_v30 = vadd.f32 %v1434_v10, %v934_v28  ;;  %v28_v10 = vld [vmem:[%s1561_s3 + $0x18] sm:$0xff]  ;;  %s1335_s3 = smov [#allocation2]  }
0x13ba   :  { %1230 = vmatpush3.msra.mxu1 %v28_v10  ;;  %s1054_s20 = sshll.u32 %s1335_s3, 4  ;;  %s1055_s20 = int_to_ptr.vmem [resolvable:$true] %s1054_s20 }
0x13bb   :  { %1301 = vtanh.f32 %v936_v30  ;;  %v1079_v32 = vmul.f32 -1.442695, %v936_v30  ;;  %1231 = vmatprep.subr.mxu1 %v1331_v3  ;;  %s1309_s21 = scalar_lea.vmem %s1055_s20, 32  ;;  %p1314_p1 = scmp.lt.s32.totalorder %s1055_s20, %s1055_s20 }
0x13bc   :  { %1232 = vmatpush3.msra.mxu1 %v27_v42  ;;  %p1310_p0 = scmp.ne.s32.totalorder %s1055_s20, %s1309_s21  ;;  %p1315_p2 = scmp.lt.s32.totalorder %s1309_s21, %s1309_s21 }
0x13bd   :  { %1303 = vpow2.f32 %v1079_v32  ;;  %1233 = vmatprep.subr.mxu1 %v1331_v3 }
0x13be   :  { %1234 = vmatpush3.msra.mxu1 %v26_v43  ;;  %p1316_p3 = por %p1315_p2, %p1314_p1 }
0x13bf   :  { %1235 = vmatprep.subr.mxu1 %v1331_v3 }
0x13c0   :  { %1236 = vmatpush3.msra.mxu1 %v25_v44  ;;  %p1317_p4 = pnand %p1316_p3, %p1310_p0 }
0x13c8   :  { %v1302_v31 = vpop.eup %1301 }
0x13c9   :  { %949 = vrot.lane.b32.xlu0 %v1302_v31, %s1333_s0 }
0x13ca   :  { %v1304_v33 = vpop.eup %1303 }
0x13cb   :  { %v940_v34 = vadd.f32 1.0, %v1304_v33 }
0x13cd   :  { %1305 = vrcp.f32 %v940_v34 }
0x13da   :  { %v1306_v35 = vpop.eup %1305 }
0x13db   :  { %v947_v39 = vmul.f32 %v1306_v35, %v945_v38 }
0x143b   :  { %v950_v36 = vpop.permute.xlu0 %949 }
0x143c   :  { %v952_v37 = vmul.f32 %v1306_v35, %v950_v36 }
0x143e   :  { %954 = vrot.lane.b32.xlu1 %v952_v37, %s1333_s0 }
0x14b0   :  { %v955_v40 = vpop.permute.xlu1 %954 }
0x14b1   :  { %v957_v41 = vadd.f32 %v955_v40, %v947_v39 }
0x14b3   :  { %1307 = vtanh.f32 %v957_v41 }
0x14c0   :  { %v1308_v45 = vpop.eup %1307 }
0x14c1   :  { %960 = vrot.lane.b32.xlu0 %v1308_v45, %s1333_s0 }
0x1533   :  { %v961_v46 = vpop.permute.xlu0 %960 }
0x1534   :  { %v963_v47 = vmul.f32 %v1306_v35, %v961_v46 }
0x1536   :  { %v971_v48 = vrot.slane %v963_v47, 6 }
0x1538   :  { %972 = vrot.lane.b32.xlu1 %v971_v48, %s1334_s2 }
0x15aa   :  { %v973_v49 = vpop.permute.xlu1 %972 }
0x15ab   :  { %1238 = vmatmul.mubr.msk.f32.vlgmr.msra.gmra.mxu1 %vm121_vm3, %v973_v49 }
0x166b   :  { %v1042_v51 = vpop.f32.mrf.mxu1 }
0x166c   :  { %v1043_v3 = vadd.f32 %v1080_v50, %v1042_v51 }
0x166d   :  { %v1239_v1 = vpop.f32.mrf.mxu1 }
0x166e   :  { %1047 = vst.msk [vmem:[#allocation2] sm:$0x3] %vm1046_vm4, %v1043_v3 }
0x166f   :  { %1320 = shalt.err (!%p1317_p4)
}
0x1670   :  { %1057 = dma.vmem_to_hbm [thread:$0]  %s1055_s20, 32, %s1563_s5, [#allocation3]  }
0x1671   :  { %1329 = dma.done.wait [#allocation3], 32  }
0x1672   :  { %1330 = vsyncadd [#allocation3], 4294967264 }
0x1673   :  { %1061 = vsyncpa [#allocation3], 1 }

</bundles_post_ra>
